<compile_context>
chip_gen: v5e
topology: v5e:2x2
jax: 0.10.0
libtpu: 0.0.40
codegen_flags: <defaults>
</compile_context>

<pallas_src>
import functools

import jax
import jax.numpy as jnp
from jax.experimental import pallas as pl
from jax.experimental.pallas import tpu as pltpu

_LANES = 128
_MIN_BLOCK_BYTES = 1 << 20   # ~1 MiB per input block: past the HBM-roofline knee


def _vmem_budget_bytes() -> int:
    """Total budget for the in-flight (double-buffered) input blocks."""
    try:
        kind = jax.devices()[0].device_kind.lower()
    except Exception:
        kind = ""
    if "v7" in kind:
        return 40 * 1024 * 1024          # 64 MiB physical per TC: keep >=25% headroom
    if "v5" in kind and ("lite" in kind or "5e" in kind):
        return 48 * 1024 * 1024          # v5e: lower HBM BW, mid-size blocks suffice
    if any(tag in kind for tag in ("v4", "v5", "v6")):
        return 96 * 1024 * 1024          # 128 MiB physical VMEM
    return 40 * 1024 * 1024              # unknown chip: conservative


def _pick_tiles(nc, h, w, itemsize, per_block_budget):
    """Pick (tile_nc, tile_w): the largest blocks that fit the per-block budget,
    preferring (in order) blocks >= ~1 MiB, an NC grid >= 2 (megacore split),
    >= 4 total grid steps (pipeline overlap), then raw block size."""
    tw_cands = [w]                                        # full W (always legal)
    if w % _LANES == 0:
        tw_cands += [t for t in range(w - _LANES, 0, -_LANES) if w % t == 0]
    nc_divs = [d for d in range(nc, 0, -1) if nc % d == 0]

    best, best_key = None, None
    for tw in tw_cands:
        for d in nc_divs:
            bb = d * h * tw * itemsize
            if bb > per_block_budget:
                continue
            g_nc, g_w = nc // d, w // tw
            key = (
                min(bb, _MIN_BLOCK_BYTES),   # 1) reach ~1 MiB blocks first
                min(g_nc, 2),                # 2) 2-way NC split for megacore
                min(g_nc * g_w, 4),          # 3) >=4 grid steps for pipelining
                bb,                          # 4) then: the bigger the better
            )
            if best_key is None or key > best_key:
                best, best_key = (d, tw), key
    if best is None:
        # Pathological shape: a single (1, H, W) row exceeds the budget and W
        # is not 128-divisible.  Fall back; the raised vmem_limit covers it.
        # TODO(synk): tile H with a squared-sum carry if such shapes ever occur.
        best = (1, w)
    return best


def _epe_kernel(out_ref, tgt_ref, res_ref, acc_ref, *, div_flow):
    """Grid = (NC tiles, W tiles).  Each step handles a (TILE_NC, H, TILE_W)
    slab; per-(nc, w) L2 norms over H accumulate element-wise into a
    lane-resident VMEM accumulator; the last W step writes this NC tile's
    partial sum, splatted across 128 lanes for an aligned, unmasked store."""
    j = pl.program_id(1)

    @pl.when(j == 0)
    def _init():
        acc_ref[...] = jnp.zeros_like(acc_ref)

    o = out_ref[...].astype(jnp.float32)
    t = tgt_ref[...].astype(jnp.float32)
    diff = div_flow * t - o                        # (TILE_NC, H, TILE_W)
    sq_sum_h = jnp.sum(diff * diff, axis=1)        # reduce over H -> (TILE_NC, TILE_W)
    acc_ref[...] += jnp.sqrt(sq_sum_h)             # L2 norm over H (EUP sqrt, free slot)

    @pl.when(j == pl.num_programs(1) - 1)
    def _finalize():
        s = jnp.sum(acc_ref[...], axis=1, keepdims=True)   # (TILE_NC, 1)
        s = jnp.sum(s, axis=0, keepdims=True)              # (1, 1)
        res_ref[...] = jnp.broadcast_to(s, (1, _LANES))[None]   # (1, 1, 128)


def epe_loss(output, target, div_flow=0.05):
    """EPELoss.forward.  output, target: (N, C, H, W).  Returns [scalar]."""
    assert output.shape == target.shape, (output.shape, target.shape)
    n, c, h, w = output.shape
    nc = n * c

    # Free reshapes (same memory layout as NCHW); no dtype upcast here -- the
    # kernel casts to f32 after the load, so HBM traffic stays at native width.
    out_f = output.reshape(nc, h, w)
    tgt_f = target.reshape(nc, h, w)

    itemsize = max(jnp.dtype(output.dtype).itemsize,
                   jnp.dtype(target.dtype).itemsize)
    budget = _vmem_budget_bytes()
    per_block_budget = budget // 4          # 2 inputs x 2 pipeline buffers
    tile_nc, tile_w = _pick_tiles(nc, h, w, itemsize, per_block_budget)
    g_nc, g_w = nc // tile_nc, w // tile_w

    in_flight = 2 * 2 * tile_nc * h * tile_w * itemsize
    acc_bytes = tile_nc * max(tile_w, _LANES) * 4
    vmem_limit = int(max(16 << 20, in_flight + acc_bytes + (2 << 20)))

    total = nc * h * w
    cost = pl.CostEstimate(
        flops=3 * total + nc * w,                      # sub, mul, add + sqrt-adds
        transcendentals=nc * w,                        # sqrt per (nc, w) element
        bytes_accessed=2 * total * itemsize + g_nc * _LANES * 4,
    )

    kernel = functools.partial(_epe_kernel, div_flow=float(div_flow))

    partials = pl.pallas_call(
        kernel,
        out_shape=jax.ShapeDtypeStruct((g_nc, 1, _LANES), jnp.float32),
        grid_spec=pltpu.PrefetchScalarGridSpec(
            num_scalar_prefetch=0,
            grid=(g_nc, g_w),
            in_specs=[
                pl.BlockSpec((tile_nc, h, tile_w), lambda i, j: (i, 0, j)),
                pl.BlockSpec((tile_nc, h, tile_w), lambda i, j: (i, 0, j)),
            ],
            out_specs=pl.BlockSpec((1, 1, _LANES), lambda i, j: (i, 0, 0)),
            scratch_shapes=[pltpu.VMEM((tile_nc, tile_w), jnp.float32)],
        ),
        compiler_params=pltpu.CompilerParams(
            # NC axis parallel (megacore split); W axis accumulates (reduction last).
            dimension_semantics=("parallel", "arbitrary"),
            vmem_limit_bytes=vmem_limit,
        ),
        cost_estimate=cost,
    )(out_f, tgt_f)

    # Mean over the (N, W, C) tensor of per-H norms -> N*C*W elements.
    inv_count = 1.0 / float(nc * w)
    epevalue = jnp.sum(partials[:, 0, 0]) * inv_count
    return [epevalue]


def _epe_loss_ref(output, target, div_flow=0.05):
    """Pure-JAX reference mirroring the PyTorch code (norm over H, then mean)."""
    diff = div_flow * target.astype(jnp.float32) - output.astype(jnp.float32)
    norms = jnp.sqrt(jnp.sum(diff * diff, axis=2))   # reduce over H -> (N, C, W)
    return jnp.mean(norms)


if __name__ == "__main__":
    key = jax.random.PRNGKey(0)
    k1, k2, k3, k4 = jax.random.split(key, 4)

    # Primary small-shape check (matches the module's NCHW forward).
    N, C, H, W = 2, 4, 16, 16
    output = jax.random.normal(k1, (N, C, H, W), dtype=jnp.float32)
    target = jax.random.normal(k2, (N, C, H, W), dtype=jnp.float32)

    (epe,) = epe_loss(output, target)
    epe = jax.block_until_ready(epe)
    ref = jax.block_until_ready(_epe_loss_ref(output, target))
    assert jnp.allclose(epe, ref, rtol=1e-5, atol=1e-6), (float(epe), float(ref))

    # Secondary check exercising a 128-divisible W (lane-dense tiling path).
    N2, C2, H2, W2 = 2, 2, 24, 256
    output2 = jax.random.normal(k3, (N2, C2, H2, W2), dtype=jnp.float32)
    target2 = jax.random.normal(k4, (N2, C2, H2, W2), dtype=jnp.float32)

    (epe2,) = epe_loss(output2, target2)
    epe2 = jax.block_until_ready(epe2)
    ref2 = jax.block_until_ready(_epe_loss_ref(output2, target2))
    assert jnp.allclose(epe2, ref2, rtol=1e-5, atol=1e-6), (float(epe2), float(ref2))

    print("KERNEL_OK")
</pallas_src>

<mosaic_0001>
module attributes {stable_mosaic.version = 11 : i64} {
  func.func @_epe_kernel(%arg0: i32, %arg1: i32, %arg2: memref<8x16x16xf32, #tpu.memory_space<vmem>>, %arg3: memref<8x16x16xf32, #tpu.memory_space<vmem>>, %arg4: memref<1x1x128xf32, #tpu.memory_space<vmem>>, %arg5: memref<8x16xf32, #tpu.memory_space<vmem>>) attributes {dimension_semantics = [#tpu.dimension_semantics<parallel>, #tpu.dimension_semantics<arbitrary>], iteration_bounds = array<i64: 1, 1>, scalar_prefetch = 0 : i64, scratch_operands = 1 : i64, tpu.core_type = #tpu.core_type<tc>, window_params = [{transform_indices = @transform_0, window_bounds = array<i64: 8, 16, 16>}, {transform_indices = @transform_1, window_bounds = array<i64: 8, 16, 16>}, {transform_indices = @transform_2, window_bounds = array<i64: 1, 1, 128>}]} {
    %c0_i32 = arith.constant 0 : i32
    %0 = arith.cmpi eq, %arg1, %c0_i32 : i32
    %1 = arith.extui %0 : i1 to i32
    %c0_i32_0 = arith.constant 0 : i32
    %2 = arith.cmpi ne, %1, %c0_i32_0 : i32
    scf.if %2 {
      %cst_13 = arith.constant 0.000000e+00 : f32
      %17 = vector.broadcast %cst_13 : f32 to vector<8x16xf32>
      %c0_14 = arith.constant 0 : index
      %c0_15 = arith.constant 0 : index
      %18 = vector.load %arg5[%c0_14, %c0_15] : memref<8x16xf32, #tpu.memory_space<vmem>>, vector<8x16xf32>
      tpu.vector_store %arg5[%c0_14, %c0_15], %17 {strides = array<i32>} : memref<8x16xf32, #tpu.memory_space<vmem>>, vector<8x16xf32>,
    } else {
    }
    %c0 = arith.constant 0 : index
    %c0_1 = arith.constant 0 : index
    %c0_2 = arith.constant 0 : index
    %3 = vector.load %arg2[%c0, %c0_1, %c0_2] : memref<8x16x16xf32, #tpu.memory_space<vmem>>, vector<8x16x16xf32>
    %c0_3 = arith.constant 0 : index
    %c0_4 = arith.constant 0 : index
    %c0_5 = arith.constant 0 : index
    %4 = vector.load %arg3[%c0_3, %c0_4, %c0_5] : memref<8x16x16xf32, #tpu.memory_space<vmem>>, vector<8x16x16xf32>
    %cst = arith.constant 5.000000e-02 : f32
    %5 = vector.broadcast %cst : f32 to vector<8x16x16xf32>
    %6 = arith.mulf %5, %4 : vector<8x16x16xf32>
    %7 = arith.subf %6, %3 : vector<8x16x16xf32>
    %8 = arith.mulf %7, %7 : vector<8x16x16xf32>
    %cst_6 = arith.constant dense<0.000000e+00> : vector<8x16xf32>
    %9 = vector.multi_reduction <add>, %8, %cst_6 [1] : vector<8x16x16xf32> to vector<8x16xf32>
    %c0_7 = arith.constant 0 : index
    %c0_8 = arith.constant 0 : index
    %10 = vector.load %arg5[%c0_7, %c0_8] : memref<8x16xf32, #tpu.memory_space<vmem>>, vector<8x16xf32>
    %11 = math.sqrt %9 : vector<8x16xf32>
    %12 = arith.addf %10, %11 : vector<8x16xf32>
    %c0_9 = arith.constant 0 : index
    %c0_10 = arith.constant 0 : index
    %13 = vector.load %arg5[%c0_9, %c0_10] : memref<8x16xf32, #tpu.memory_space<vmem>>, vector<8x16xf32>
    tpu.vector_store %arg5[%c0_9, %c0_10], %12 {strides = array<i32>} : memref<8x16xf32, #tpu.memory_space<vmem>>, vector<8x16xf32>,
    %c0_i32_11 = arith.constant 0 : i32
    %14 = arith.cmpi eq, %arg1, %c0_i32_11 : i32
    %15 = arith.extui %14 : i1 to i32
    %c0_i32_12 = arith.constant 0 : i32
    %16 = arith.cmpi ne, %15, %c0_i32_12 : i32
    scf.if %16 {
      %c0_13 = arith.constant 0 : index
      %c0_14 = arith.constant 0 : index
      %17 = vector.load %arg5[%c0_13, %c0_14] : memref<8x16xf32, #tpu.memory_space<vmem>>, vector<8x16xf32>
      %cst_15 = arith.constant dense<0.000000e+00> : vector<8xf32>
      %18 = vector.multi_reduction <add>, %17, %cst_15 [1] : vector<8x16xf32> to vector<8xf32>
      %19 = vector.shape_cast %18 : vector<8xf32> to vector<8x1xf32>
      %cst_16 = arith.constant dense<0.000000e+00> : vector<1xf32>
      %20 = vector.multi_reduction <add>, %19, %cst_16 [0] : vector<8x1xf32> to vector<1xf32>
      %21 = vector.shape_cast %20 : vector<1xf32> to vector<1x1xf32>
      %22 = vector.shape_cast %21 : vector<1x1xf32> to vector<1x1xf32>
      %23 = vector.broadcast %22 : vector<1x1xf32> to vector<1x128xf32>
      %24 = vector.shape_cast %23 : vector<1x128xf32> to vector<1x1x128xf32>
      %c0_17 = arith.constant 0 : index
      %c0_18 = arith.constant 0 : index
      %c0_19 = arith.constant 0 : index
      %25 = vector.load %arg4[%c0_17, %c0_18, %c0_19] : memref<1x1x128xf32, #tpu.memory_space<vmem>>, vector<1x1x128xf32>
      tpu.vector_store %arg4[%c0_17, %c0_18, %c0_19], %24 {strides = array<i32>} : memref<1x1x128xf32, #tpu.memory_space<vmem>>, vector<1x1x128xf32>,
    } else {
    }
    return
  }
  func.func @transform_0(%arg0: i32, %arg1: i32) -> (i32, i32, i32) {
    %c0_i32 = arith.constant 0 : i32
    %c0_i32_0 = arith.constant 0 : i32
    return %arg0, %c0_i32, %arg1 : i32, i32, i32
  }
  func.func @transform_1(%arg0: i32, %arg1: i32) -> (i32, i32, i32) {
    %c0_i32 = arith.constant 0 : i32
    %c0_i32_0 = arith.constant 0 : i32
    return %arg0, %c0_i32, %arg1 : i32, i32, i32
  }
  func.func @transform_2(%arg0: i32, %arg1: i32) -> (i32, i32, i32) {
    %c0_i32 = arith.constant 0 : i32
    %c0_i32_0 = arith.constant 0 : i32
    %c0_i32_1 = arith.constant 0 : i32
    return %arg0, %c0_i32, %c0_i32_0 : i32, i32, i32
  }
}

</mosaic_0001>

<bundles_post_ra>
// kernel: tpu_custom_call.1
= control target key start
LH: loop header
LB: loop body
LE: loop exit
PB: predicated region body
PF: predicated region fallthrough
CT: control target
= control target key end

     0   :  { %7 = vsyncpa [#allocation4], 0  ;;  %s613_s0 = inlined_call_operand.hbm [shape: f32[8,16,16], index: 0, kind: input, shape index: {}]   ;;  %s614_s1 = inlined_call_operand.hbm [shape: f32[8,16,16], index: 1, kind: input, shape index: {}]   ;;  %s615_s2 = inlined_call_operand.hbm [shape: f32[1,1,128], index: 2, kind: output, shape index: {}]  }
   0x1   :  { %8 = vsyncpa [#allocation7], 0 }
   0x2   :  { %9 = vsyncpa [#allocation5], 0  ;;  %s14_s11 = sshll.u32 %s613_s0, 4  ;;  %s457_s12 = smov [#allocation3]   ;;  %s15_s11 = int_to_ptr.hbm [resolvable:$true] %s14_s11 }
   0x3   :  { %s16_s13 = sshll.u32 %s457_s12, 4  ;;  %s27_s16 = sshll.u32 %s614_s1, 4  ;;  %s17_s13 = int_to_ptr.vmem [resolvable:$true] %s16_s13  ;;  %s28_s16 = int_to_ptr.hbm [resolvable:$true] %s27_s16 }
   0x4   :  { %s458_s17 = smov 128   ;;  %s459_s18 = smov 8  }
   0x5   :  { %22 = dma.hbm_to_vmem [thread:$0]  %s15_s11, 2048, %s17_s13, [#allocation4], %s458_s17, %s458_s17, %s459_s18  }
   0x6   :  { %s460_s19 = smov [#allocation6]  }
   0x7   :  { %s29_s20 = sshll.u32 %s460_s19, 4  ;;  %s30_s20 = int_to_ptr.vmem [resolvable:$true] %s29_s20 }
   0x8   :  { %35 = dma.hbm_to_vmem [thread:$0]  %s28_s16, 2048, %s30_s20, [#allocation7], %s458_s17, %s458_s17, %s459_s18  }
   0x9   :  { %451 = dma.done.wait [#allocation4], 2048  }
   0xa   :  { %452 = vsyncadd [#allocation4], 4294965248 }
   0xb   :  { %453 = dma.done.wait [#allocation7], 2048  }
   0xc   :  { %454 = vsyncadd [#allocation7], 4294965248  ;;  %vm616_vm0 = vcmask 130048   ;;  %v461_v0 = vmov 0.0   ;;  %v50_v1 = vld [vmem:[#allocation3] sm:$0xff]  ;;  %v51_v2 = vld [vmem:[#allocation3 + $0x8] sm:$0xff] }
   0xd   :  { %49 = vst.msk [vmem:[#allocation2] sm:$0xff] %vm616_vm0, %v461_v0  ;;  %v52_v3 = vld [vmem:[#allocation3 + $0x10] sm:$0xff]  ;;  %v66_v4 = vld [vmem:[#allocation6] sm:$0xff]  ;;  %v67_v5 = vld [vmem:[#allocation6 + $0x8] sm:$0xff]  ;;  %vm308_vm11 = vcmask 1041409   ;;  %vm310_vm12 = vcmask 1042434  }
   0xe   :  { %v53_v6 = vld [vmem:[#allocation3 + $0x18] sm:$0xff]  ;;  %v68_v7 = vld [vmem:[#allocation6 + $0x10] sm:$0xff]  ;;  %v70_v9 = vld [vmem:[#allocation6 + $0x20] sm:$0xff]  ;;  %v82_v10 = vmul.f32 0.05, %v66_v4  ;;  %vm312_vm15 = vcmask 1043459  }
   0xf   :  { %v69_v8 = vld [vmem:[#allocation6 + $0x18] sm:$0xff]  ;;  %v54_v11 = vld [vmem:[#allocation3 + $0x20] sm:$0xff]  ;;  %v71_v12 = vld [vmem:[#allocation6 + $0x28] sm:$0xff]  ;;  %v83_v15 = vmul.f32 0.05, %v67_v5  ;;  %s462_s0 = smov [#allocation8]  }
  0x10   :  { %v72_v13 = vld [vmem:[#allocation6 + $0x30] sm:$0xff]  ;;  %v73_v14 = vld [vmem:[#allocation6 + $0x38] sm:$0xff]  ;;  %v55_v16 = vld [vmem:[#allocation3 + $0x28] sm:$0xff]  ;;  %v84_v20 = vmul.f32 0.05, %v68_v7  ;;  %v98_v21 = vsub.f32 %v82_v10, %v50_v1  ;;  %s344_s1 = sshll.u32 %s462_s0, 4  ;;  %s345_s1 = int_to_ptr.vmem [resolvable:$true] %s344_s1 }
  0x11   :  { %v74_v17 = vld [vmem:[#allocation6 + $0x40] sm:$0xff]  ;;  %v75_v18 = vld [vmem:[#allocation6 + $0x48] sm:$0xff]  ;;  %v76_v19 = vld [vmem:[#allocation6 + $0x50] sm:$0xff]  ;;  %v85_v28 = vmul.f32 0.05, %v69_v8  ;;  %v99_v29 = vsub.f32 %v83_v15, %v51_v2  ;;  %s346_s23 = sshll.u32 %s615_s2, 4  ;;  %s347_s23 = int_to_ptr.hbm [resolvable:$true] %s346_s23 }
  0x12   :  { %v56_v22 = vld [vmem:[#allocation3 + $0x30] sm:$0xff]  ;;  %v57_v23 = vld [vmem:[#allocation3 + $0x38] sm:$0xff]  ;;  %v58_v24 = vld [vmem:[#allocation3 + $0x40] sm:$0xff]  ;;  %v86_v36 = vmul.f32 0.05, %v70_v9  ;;  %v100_v38 = vsub.f32 %v84_v20, %v52_v3  ;;  %v114_v39 = vmul.f32 %v98_v21, %v98_v21 }
  0x13   :  { %v77_v25 = vld [vmem:[#allocation6 + $0x58] sm:$0xff]  ;;  %v78_v26 = vld [vmem:[#allocation6 + $0x60] sm:$0xff]  ;;  %v79_v27 = vld [vmem:[#allocation6 + $0x68] sm:$0xff]  ;;  %v87_v37 = vmul.f32 0.05, %v71_v12  ;;  %v101_v46 = vsub.f32 %v85_v28, %v53_v6  ;;  %v115_v2 = vmul.f32 %v99_v29, %v99_v29 }
  0x14   :  { %v59_v30 = vld [vmem:[#allocation3 + $0x48] sm:$0xff]  ;;  %v60_v31 = vld [vmem:[#allocation3 + $0x50] sm:$0xff]  ;;  %v61_v32 = vld [vmem:[#allocation3 + $0x58] sm:$0xff]  ;;  %v88_v43 = vmul.f32 0.05, %v72_v13  ;;  %v102_v50 = vsub.f32 %v86_v36, %v54_v11  ;;  %v116_v3 = vmul.f32 %v100_v38, %v100_v38 }
  0x15   :  { %v62_v33 = vld [vmem:[#allocation3 + $0x60] sm:$0xff]  ;;  %v80_v34 = vld [vmem:[#allocation6 + $0x70] sm:$0xff]  ;;  %v81_v35 = vld [vmem:[#allocation6 + $0x78] sm:$0xff]  ;;  %v89_v44 = vmul.f32 0.05, %v73_v14  ;;  %v103_v54 = vsub.f32 %v87_v37, %v55_v16  ;;  %v117_v4 = vmul.f32 %v101_v46, %v101_v46 }
  0x16   :  { %v63_v40 = vld [vmem:[#allocation3 + $0x68] sm:$0xff]  ;;  %v64_v41 = vld [vmem:[#allocation3 + $0x70] sm:$0xff]  ;;  %v65_v42 = vld [vmem:[#allocation3 + $0x78] sm:$0xff]  ;;  %v90_v45 = vmul.f32 0.05, %v74_v17  ;;  %v104_v56 = vsub.f32 %v88_v43, %v56_v22  ;;  %v118_v5 = vmul.f32 %v102_v50, %v102_v50  ;;  %v131_v17 = vsel %vm616_vm0, %v114_v39, 0.0 }
  0x17   :  { %v91_v47 = vmul.f32 0.05, %v75_v18  ;;  %v92_v48 = vmul.f32 0.05, %v76_v19  ;;  %v93_v49 = vmul.f32 0.05, %v77_v25  ;;  %v105_v57 = vsub.f32 %v89_v44, %v57_v23 }
  0x18   :  { %v94_v51 = vmul.f32 0.05, %v78_v26  ;;  %v95_v52 = vmul.f32 0.05, %v79_v27  ;;  %v96_v53 = vmul.f32 0.05, %v80_v34  ;;  %v106_v58 = vsub.f32 %v90_v45, %v58_v24 }
  0x19   :  { %v97_v55 = vmul.f32 0.05, %v81_v35  ;;  %v107_v59 = vsub.f32 %v91_v47, %v59_v30  ;;  %v108_v60 = vsub.f32 %v92_v48, %v60_v31  ;;  %v109_v61 = vsub.f32 %v93_v49, %v61_v32 }
  0x1a   :  { %v110_v62 = vsub.f32 %v94_v51, %v62_v33  ;;  %v111_v63 = vsub.f32 %v95_v52, %v63_v40  ;;  %v112_v0 = vsub.f32 %v96_v53, %v64_v41  ;;  %v119_v6 = vmul.f32 %v103_v54, %v103_v54 }
  0x1b   :  { %v113_v1 = vsub.f32 %v97_v55, %v65_v42  ;;  %v120_v7 = vmul.f32 %v104_v56, %v104_v56  ;;  %v121_v8 = vmul.f32 %v105_v57, %v105_v57  ;;  %v122_v9 = vmul.f32 %v106_v58, %v106_v58 }
  0x1c   :  { %v123_v10 = vmul.f32 %v107_v59, %v107_v59  ;;  %v124_v11 = vmul.f32 %v108_v60, %v108_v60  ;;  %v125_v12 = vmul.f32 %v109_v61, %v109_v61  ;;  %v126_v13 = vmul.f32 %v110_v62, %v110_v62 }
  0x1d   :  { %v127_v14 = vmul.f32 %v111_v63, %v111_v63  ;;  %v128_v15 = vmul.f32 %v112_v0, %v112_v0  ;;  %v129_v16 = vmul.f32 %v113_v1, %v113_v1  ;;  %v132_v18 = vsel %vm616_vm0, %v115_v2, 0.0 }
  0x1e   :  { %v133_v19 = vadd.f32 %v132_v18, %v131_v17  ;;  %v140_v20 = vsel %vm616_vm0, %v116_v3, 0.0  ;;  %v141_v21 = vsel %vm616_vm0, %v117_v4, 0.0  ;;  %v149_v22 = vsel %vm616_vm0, %v118_v5, 0.0 }
  0x1f   :  { %v142_v23 = vadd.f32 %v141_v21, %v140_v20  ;;  %v150_v24 = vsel %vm616_vm0, %v119_v6, 0.0  ;;  %v158_v25 = vsel %vm616_vm0, %v120_v7, 0.0  ;;  %v159_v26 = vsel %vm616_vm0, %v121_v8, 0.0 }
  0x20   :  { %v134_v27 = vrot.slane %v133_v19, 4  ;;  %v151_v28 = vadd.f32 %v150_v24, %v149_v22  ;;  %v160_v29 = vadd.f32 %v159_v26, %v158_v25  ;;  %v167_v30 = vsel %vm616_vm0, %v122_v9, 0.0 }
  0x21   :  { %v143_v31 = vrot.slane %v142_v23, 4  ;;  %v168_v32 = vsel %vm616_vm0, %v123_v10, 0.0  ;;  %v176_v33 = vsel %vm616_vm0, %v124_v11, 0.0  ;;  %v177_v34 = vsel %vm616_vm0, %v125_v12, 0.0 }
  0x22   :  { %v135_v35 = vadd.f32 %v134_v27, %v133_v19  ;;  %v152_v36 = vrot.slane %v151_v28, 4  ;;  %v161_v37 = vrot.slane %v160_v29, 4  ;;  %v169_v38 = vadd.f32 %v168_v32, %v167_v30 }
  0x23   :  { %v144_v39 = vadd.f32 %v143_v31, %v142_v23  ;;  %v178_v40 = vadd.f32 %v177_v34, %v176_v33  ;;  %v185_v41 = vsel %vm616_vm0, %v126_v13, 0.0  ;;  %v186_v42 = vsel %vm616_vm0, %v127_v14, 0.0 }
  0x24   :  { %v136_v43 = vrot.slane %v135_v35, 2  ;;  %v153_v44 = vadd.f32 %v152_v36, %v151_v28  ;;  %v162_v45 = vadd.f32 %v161_v37, %v160_v29  ;;  %v170_v46 = vrot.slane %v169_v38, 4 }
  0x25   :  { %v145_v47 = vrot.slane %v144_v39, 2  ;;  %v179_v48 = vrot.slane %v178_v40, 4  ;;  %v187_v49 = vadd.f32 %v186_v42, %v185_v41  ;;  %v194_v50 = vsel %vm616_vm0, %v128_v15, 0.0 }
  0x26   :  { %v137_v51 = vadd.f32 %v136_v43, %v135_v35  ;;  %v154_v52 = vrot.slane %v153_v44, 2  ;;  %v163_v53 = vrot.slane %v162_v45, 2  ;;  %v171_v54 = vadd.f32 %v170_v46, %v169_v38 }
  0x27   :  { %v146_v55 = vadd.f32 %v145_v47, %v144_v39  ;;  %v180_v56 = vadd.f32 %v179_v48, %v178_v40  ;;  %v188_v57 = vrot.slane %v187_v49, 4  ;;  %v195_v58 = vsel %vm616_vm0, %v129_v16, 0.0 }
  0x28   :  { %v138_v59 = vrot.slane %v137_v51, 1  ;;  %v155_v60 = vadd.f32 %v154_v52, %v153_v44  ;;  %v164_v61 = vadd.f32 %v163_v53, %v162_v45  ;;  %v172_v62 = vrot.slane %v171_v54, 2 }
  0x29   :  { %v147_v63 = vrot.slane %v146_v55, 1  ;;  %v181_v0 = vrot.slane %v180_v56, 2  ;;  %v189_v1 = vadd.f32 %v188_v57, %v187_v49  ;;  %v196_v2 = vadd.f32 %v195_v58, %v194_v50 }
  0x2a   :  { %v501_v3 = vadd.f32 %v138_v59, %v137_v51  ;;  %v156_v4 = vrot.slane %v155_v60, 1  ;;  %v165_v5 = vrot.slane %v164_v61, 1  ;;  %v173_v6 = vadd.f32 %v172_v62, %v171_v54 }
  0x2b   :  { %v503_v7 = vadd.f32 %v147_v63, %v146_v55  ;;  %v182_v8 = vadd.f32 %v181_v0, %v180_v56  ;;  %v190_v9 = vrot.slane %v189_v1, 2  ;;  %v197_v10 = vrot.slane %v196_v2, 4 }
  0x2c   :  { %v505_v11 = vadd.f32 %v156_v4, %v155_v60  ;;  %v174_v12 = vrot.slane %v173_v6, 1  ;;  %363 = vrsqrt.f32 %v501_v3  ;;  %v508_v16 = vadd.f32 %v165_v5, %v164_v61 }
  0x2d   :  { %v183_v13 = vrot.slane %v182_v8, 1  ;;  %v191_v14 = vadd.f32 %v190_v9, %v189_v1  ;;  %v198_v15 = vadd.f32 %v197_v10, %v196_v2  ;;  %365 = vrsqrt.f32 %v503_v7 }
  0x2e   :  { %v511_v17 = vadd.f32 %v174_v12, %v173_v6  ;;  %367 = vrsqrt.f32 %v505_v11  ;;  %vm211_vm1 = vcmp.eq.f32.partialorder %v501_v3, inf  ;;  %vm213_vm2 = vcmp.eq.f32.partialorder %v501_v3, 0.0 }
  0x2f   :  { %v192_v18 = vrot.slane %v191_v14, 1  ;;  %v199_v19 = vrot.slane %v198_v15, 2  ;;  %v513_v20 = vadd.f32 %v183_v13, %v182_v8  ;;  %369 = vrsqrt.f32 %v508_v16 }
  0x30   :  { %371 = vrsqrt.f32 %v511_v17  ;;  %v214_v31 = vand.u32 2147483648, %v501_v3  ;;  %vm223_vm3 = vcmp.eq.f32.partialorder %v503_v7, inf  ;;  %vm225_vm4 = vcmp.eq.f32.partialorder %v503_v7, 0.0 }
  0x31   :  { %v200_v21 = vadd.f32 %v199_v19, %v198_v15  ;;  %v516_v23 = vadd.f32 %v192_v18, %v191_v14  ;;  %373 = vrsqrt.f32 %v513_v20  ;;  %v226_v34 = vand.u32 2147483648, %v503_v7 }
  0x32   :  { %v364_v22 = vpop.eup %363  ;;  %vm235_vm5 = vcmp.eq.f32.partialorder %v505_v11, inf  ;;  %v238_v37 = vand.u32 2147483648, %v505_v11  ;;  %v250_v38 = vand.u32 2147483648, %v508_v16  ;;  %vm237_vm6 = vcmp.eq.f32.partialorder %v505_v11, 0.0 }
  0x33   :  { %v201_v24 = vrot.slane %v200_v21, 1  ;;  %v205_v25 = vmul.f32 %v364_v22, %v501_v3  ;;  %v366_v26 = vpop.eup %365  ;;  %375 = vrsqrt.f32 %v516_v23  ;;  %vm247_vm7 = vcmp.eq.f32.partialorder %v508_v16, inf }
  0x34   :  { %v217_v29 = vmul.f32 %v366_v26, %v503_v7  ;;  %v368_v30 = vpop.eup %367  ;;  %v262_v46 = vand.u32 2147483648, %v511_v17  ;;  %v274_v47 = vand.u32 2147483648, %v513_v20  ;;  %v286_v48 = vand.u32 2147483648, %v516_v23 }
  0x35   :  { %v522_v27 = vadd.f32 %v201_v24, %v200_v21  ;;  %v206_v28 = vmul.f32 %v364_v22, %v205_v25  ;;  %v229_v35 = vmul.f32 %v368_v30, %v505_v11  ;;  %v370_v36 = vpop.eup %369  ;;  %vm249_vm8 = vcmp.eq.f32.partialorder %v508_v16, 0.0 }
  0x36   :  { %v218_v33 = vmul.f32 %v366_v26, %v217_v29  ;;  %v372_v39 = vpop.eup %371  ;;  %v241_v43 = vmul.f32 %v370_v36, %v508_v16  ;;  %vm259_vm9 = vcmp.eq.f32.partialorder %v511_v17, inf  ;;  %vm261_vm10 = vcmp.eq.f32.partialorder %v511_v17, 0.0 }
  0x37   :  { %v207_v32 = vmul.f32 0.5, %v206_v28  ;;  %377 = vrsqrt.f32 %v522_v27  ;;  %v230_v42 = vmul.f32 %v368_v30, %v229_v35  ;;  %v374_v44 = vpop.eup %373  ;;  %v253_v45 = vmul.f32 %v372_v39, %v511_v17 }
  0x38   :  { %v219_v41 = vmul.f32 0.5, %v218_v33  ;;  %v242_v52 = vmul.f32 %v370_v36, %v241_v43  ;;  %v265_v55 = vmul.f32 %v374_v44, %v513_v20  ;;  %vm271_vm13 = vcmp.eq.f32.partialorder %v513_v20, inf }
  0x39   :  { %v208_v40 = vsub.f32 1.5, %v207_v32  ;;  %v231_v51 = vmul.f32 0.5, %v230_v42  ;;  %v376_v53 = vpop.eup %375  ;;  %v254_v54 = vmul.f32 %v372_v39, %v253_v45  ;;  %vm273_vm14 = vcmp.eq.f32.partialorder %v513_v20, 0.0 }
  0x3a   :  { %v220_v50 = vsub.f32 1.5, %v219_v41  ;;  %v243_v59 = vmul.f32 0.5, %v242_v52  ;;  %v266_v62 = vmul.f32 %v374_v44, %v265_v55  ;;  %v277_v63 = vmul.f32 %v376_v53, %v516_v23 }
  0x3b   :  { %v209_v49 = vmul.f32 %v364_v22, %v208_v40  ;;  %v232_v58 = vsub.f32 1.5, %v231_v51  ;;  %v255_v61 = vmul.f32 0.5, %v254_v54  ;;  %vm283_vm0 = vcmp.eq.f32.partialorder %v516_v23, inf }
  0x3c   :  { %v221_v57 = vmul.f32 %v366_v26, %v220_v50  ;;  %v244_v4 = vsub.f32 1.5, %v243_v59  ;;  %v267_v8 = vmul.f32 0.5, %v266_v62  ;;  %v278_v9 = vmul.f32 %v376_v53, %v277_v63 }
  0x3d   :  { %v210_v56 = vmul.f32 %v209_v49, %v501_v3  ;;  %v378_v60 = vpop.eup %377  ;;  %v233_v2 = vmul.f32 %v368_v30, %v232_v58  ;;  %v256_v6 = vsub.f32 1.5, %v255_v61  ;;  %v298_v43 = vand.u32 2147483648, %v522_v27 }
  0x3e   :  { %v222_v1 = vmul.f32 %v221_v57, %v503_v7  ;;  %v245_v13 = vmul.f32 %v370_v36, %v244_v4  ;;  %v289_v14 = vmul.f32 %v378_v60, %v522_v27  ;;  %v268_v19 = vsub.f32 1.5, %v267_v8 }
  0x3f   :  { %v212_v0 = vsel %vm211_vm1, %v501_v3, %v210_v56  ;;  %v234_v12 = vmul.f32 %v233_v2, %v505_v11  ;;  %v257_v18 = vmul.f32 %v372_v39, %v256_v6  ;;  %v279_v21 = vmul.f32 0.5, %v278_v9 }
  0x40   :  { %v215_v5 = vsel %vm213_vm2, %v214_v31, %v212_v0  ;;  %v224_v10 = vsel %vm223_vm3, %v503_v7, %v222_v1  ;;  %v246_v22 = vmul.f32 %v245_v13, %v508_v16  ;;  %v290_v24 = vmul.f32 %v378_v60, %v289_v14 }
  0x41   :  { %v227_v15 = vsel %vm225_vm4, %v226_v34, %v224_v10  ;;  %v236_v3 = vsel %vm235_vm5, %v505_v11, %v234_v12  ;;  %v258_v28 = vmul.f32 %v257_v18, %v511_v17  ;;  %v269_v29 = vmul.f32 %v374_v44, %v268_v19 }
  0x42   :  { %v309_v25 = vsel %vm308_vm11, %v227_v15, %v215_v5  ;;  %v239_v26 = vsel %vm237_vm6, %v238_v37, %v236_v3  ;;  %v280_v7 = vsub.f32 1.5, %v279_v21  ;;  %v248_v30 = vsel %vm247_vm7, %v508_v16, %v246_v22 }
  0x43   :  { %v291_v31 = vmul.f32 0.5, %v290_v24  ;;  %v311_v32 = vsel %vm310_vm12, %v239_v26, %v309_v25  ;;  %vm314_vm1 = vcmask 1044484   ;;  %v251_v33 = vsel %vm249_vm8, %v250_v38, %v248_v30 }
  0x44   :  { %v260_v11 = vsel %vm259_vm9, %v511_v17, %v258_v28  ;;  %v270_v34 = vmul.f32 %v269_v29, %v513_v20  ;;  %v281_v35 = vmul.f32 %v376_v53, %v280_v7  ;;  %v313_v39 = vsel %vm312_vm15, %v251_v33, %v311_v32 }
  0x45   :  { %v263_v36 = vsel %vm261_vm10, %v262_v46, %v260_v11  ;;  %v292_v37 = vsub.f32 1.5, %v291_v31  ;;  %vm316_vm2 = vcmask 1045509   ;;  %vm285_vm3 = vcmp.eq.f32.partialorder %v516_v23, 0.0 }
  0x46   :  { %v272_v40 = vsel %vm271_vm13, %v513_v20, %v270_v34  ;;  %v282_v16 = vmul.f32 %v281_v35, %v516_v23  ;;  %v315_v38 = vsel %vm314_vm1, %v263_v36, %v313_v39  ;;  %vm318_vm4 = vcmask 1046534  }
  0x47   :  { %v275_v41 = vsel %vm273_vm14, %v274_v47, %v272_v40  ;;  %v293_v17 = vmul.f32 %v378_v60, %v292_v37  ;;  %vm295_vm5 = vcmp.eq.f32.partialorder %v522_v27, inf  ;;  %vm297_vm6 = vcmp.eq.f32.partialorder %v522_v27, 0.0  ;;  %v203_v47 = vld [vmem:[#allocation2] sm:$0xff] }
  0x48   :  { %v284_v42 = vsel %vm283_vm0, %v516_v23, %v282_v16  ;;  %v317_v44 = vsel %vm316_vm2, %v275_v41, %v315_v38  ;;  %vm320_vm7 = vcmask 1047559   ;;  %vm617_vm0 = vcmask 130048  }
  0x49   :  { %v287_v45 = vsel %vm285_vm3, %v286_v48, %v284_v42  ;;  %v294_v46 = vmul.f32 %v293_v17, %v522_v27  ;;  %vm618_vm8 = vmmov %vm617_vm0 }
  0x4a   :  { %v319_v20 = vsel %vm318_vm4, %v287_v45, %v317_v44 }
  0x4b   :  { %v296_v49 = vsel %vm295_vm5, %v522_v27, %v294_v46 }
  0x4c   :  { %v299_v50 = vsel %vm297_vm6, %v298_v43, %v296_v49 }
  0x4d   :  { %v321_v51 = vsel %vm320_vm7, %v299_v50, %v319_v20 }
  0x4e   :  { %v323_v52 = vadd.f32 %v321_v51, %v203_v47 }
  0x50   :  { %324 = vst.msk [vmem:[#allocation2] sm:$0xff] %vm617_vm0, %v323_v52 }
  0x57   :  { %v328_v53 = vld [vmem:[#allocation2] sm:$0xff] }
  0x58   :  { %v329_v54 = vsel %vm618_vm8, %v328_v53, 0.0 }
  0x59   :  { %330 = vadd.xlane.f32.xlu0 %v329_v54 }
  0xcc   :  { %v331_v23 = vpop.xlane.xlu0 %330 }
  0xcd   :  { %v332_v48 = vrot.slane %v331_v23, 4 }
  0xcf   :  { %v333_v55 = vadd.f32 %v332_v48, %v331_v23 }
  0xd1   :  { %v334_v56 = vrot.slane %v333_v55, 2 }
  0xd3   :  { %v335_v57 = vadd.f32 %v334_v56, %v333_v55 }
  0xd5   :  { %v336_v27 = vrot.slane %v335_v57, 1 }
  0xd7   :  { %v337_v58 = vadd.f32 %v336_v27, %v335_v57 }
  0xd9   :  { %338 = vst [vmem:[#allocation8] sm:$0x1] %v337_v58 }
  0xda   :  { %349 = dma.vmem_to_hbm [thread:$0]  %s345_s1, 16, %s347_s23, [#allocation5]  }
  0xdb   :  { %455 = dma.done.wait [#allocation5], 16  }
  0xdc   :  { %456 = vsyncadd [#allocation5], 4294967280 }
  0xdd   :  { %354 = vsyncpa [#allocation4], 1 }
  0xde   :  { %355 = vsyncpa [#allocation7], 1 }
  0xdf   :  { %356 = vsyncpa [#allocation5], 1 }

</bundles_post_ra>
